<compile_context>
chip_gen: v6e
topology: v6e:2x2x1
jax: 0.10.0
libtpu: 0.0.40
codegen_flags: <defaults>
</compile_context>

<pallas_src>
import math

import jax
import jax.numpy as jnp
from jax.experimental import pallas as pl
from jax.experimental.pallas import tpu as pltpu

BN_EPS = 1e-5


def _round_up(v, m):
    return (v + m - 1) // m * m


def _vmem_budget_and_limit():
    """Per-generation tile budget (bytes) and scoped-VMEM limit."""
    try:
        cap = int(pltpu.get_tpu_info().vmem_capacity_bytes)
    except Exception:  # interpret mode / API drift: assume the smallest (v7x)
        cap = 64 << 20
    budget = max(min(cap // 4, 28 << 20), 8 << 20)   # ~28 MiB v5e/v6e, ~16 MiB v7x
    limit = int(min(budget + (4 << 20), cap // 2))
    return budget, limit


def _pick_block_n(cout):
    # 256-wide tiles match the v6e/v7x 2x256^2 MXU; 128 is the v5e-native
    # width; otherwise use the full dim (no padding, full-dim blocks are legal).
    if cout <= 256 or (cout % 128) != 0:
        return cout
    return 256 if (cout % 256) == 0 else 128


def _pick_block_m(m, fixed_bytes, per_row_bytes, budget):
    cap = _round_up(max(m, 8), 8)
    cands = sorted({cap, 4096, 2048, 1024, 512, 256, 128, 64, 32, 16, 8},
                   reverse=True)
    for c in cands:
        if c > cap:
            continue
        if fixed_bytes + c * per_row_bytes <= budget:
            return c
    return 8


def linear_block(x, w, b, gamma, beta, eps=BN_EPS, block_m=None, block_n=None):
    """x: (B, N, Cin) -> (B, N, Cout).  w: (Cout, Cin); b/gamma/beta: (Cout,)."""
    del b  # exactly cancelled by the train-mode BN mean subtraction
    B, N, Cin = x.shape
    Cout = w.shape[0]
    M = B * N
    out_dtype = x.dtype
    ib = jnp.dtype(out_dtype).itemsize

    budget, vmem_limit = _vmem_budget_and_limit()

    # ----- tile selection ---------------------------------------------------
    tn = block_n if block_n is not None else _pick_block_n(Cout)
    if Cout % tn != 0:
        tn = Cout
    num_n = Cout // tn

    # phase 1 VMEM: double-buffered x(tm,Cin) + w(Cin,tn) + y(tm,tn) + tiny stats
    fixed1 = 2 * Cin * tn * ib + 2 * 2 * tn * 4
    per_row1 = 2 * Cin * ib + 2 * tn * ib
    tm1 = block_m if block_m is not None else _pick_block_m(M, fixed1, per_row1, budget)
    num_m = pl.cdiv(M, tm1)

    # phase 2 VMEM: double-buffered y(tm,tn) + out(tm,tn) + tiny scale/shift
    per_row2 = 4 * tn * ib
    tm2 = block_m if block_m is not None else _pick_block_m(M, 4 * tn * 4, per_row2, budget)
    num_m2 = pl.cdiv(M, tm2)

    # Free reshapes / tiny one-off passes only (no full-M pad/slice/cast).
    x2d = x.reshape(M, Cin)
    wt = jnp.transpose(w).astype(out_dtype)      # (Cin, Cout), small

    mask_rows = (M % tm1) != 0

    # ----- phase 1: y = x @ W (store in x.dtype) + per-block channel stats ---
    def matmul_stats_kernel(x_ref, w_ref, y_ref, stat_ref):
        y = jnp.dot(x_ref[...], w_ref[...], preferred_element_type=jnp.float32)
        y_ref[...] = y.astype(y_ref.dtype)
        if mask_rows:
            # Last M block is partial: rows past M hold undefined data and must
            # not contaminate the statistics (their stores are masked anyway).
            rows = (pl.program_id(0) * tm1
                    + jax.lax.broadcasted_iota(jnp.int32, y.shape, 0))
            y = jnp.where(rows < M, y, 0.0)
        s = jnp.sum(y, axis=0, keepdims=True)
        ss = jnp.sum(y * y, axis=0, keepdims=True)
        stat_ref[...] = jnp.concatenate([s, ss], axis=0)[None]

    y, stats = pl.pallas_call(
        matmul_stats_kernel,
        out_shape=(
            jax.ShapeDtypeStruct((M, Cout), out_dtype),            # y (x.dtype)
            jax.ShapeDtypeStruct((num_m, 2, Cout), jnp.float32),   # partial sums
        ),
        grid_spec=pltpu.PrefetchScalarGridSpec(
            num_scalar_prefetch=0,
            grid=(num_m, num_n),
            in_specs=[
                pl.BlockSpec((tm1, Cin), lambda i, j: (i, 0)),
                pl.BlockSpec((Cin, tn), lambda i, j: (0, j)),
            ],
            out_specs=[
                pl.BlockSpec((tm1, tn), lambda i, j: (i, j)),
                pl.BlockSpec((1, 2, tn), lambda i, j: (i, 0, j)),
            ],
        ),
        compiler_params=pltpu.CompilerParams(
            dimension_semantics=("parallel", "parallel"),
            vmem_limit_bytes=vmem_limit,
        ),
        cost_estimate=pl.CostEstimate(
            flops=2 * M * Cin * Cout,
            transcendentals=0,
            bytes_accessed=(M * Cin + Cin * Cout + M * Cout) * ib
            + num_m * 2 * Cout * 4,
        ),
    )(x2d, wt)

    # ----- tiny JAX math: fold BN into per-channel scale / shift -------------
    s = jnp.sum(stats[:, 0, :], axis=0)
    ss = jnp.sum(stats[:, 1, :], axis=0)
    inv_m = 1.0 / float(M)
    mean = s * inv_m
    var = jnp.maximum(ss * inv_m - mean * mean, 0.0)
    scale1d = gamma.astype(jnp.float32) * jax.lax.rsqrt(var + eps)
    shift1d = beta.astype(jnp.float32) - mean * scale1d
    scale = scale1d.reshape(1, Cout)
    shift = shift1d.reshape(1, Cout)

    # ----- phase 2: out = max(y*scale + shift, 0), in place over y -----------
    def bn_relu_kernel(y_ref, scale_ref, shift_ref, o_ref):
        yv = y_ref[...].astype(jnp.float32)
        o_ref[...] = jnp.maximum(
            yv * scale_ref[...] + shift_ref[...], 0.0).astype(o_ref.dtype)

    out = pl.pallas_call(
        bn_relu_kernel,
        out_shape=jax.ShapeDtypeStruct((M, Cout), out_dtype),
        grid_spec=pltpu.PrefetchScalarGridSpec(
            num_scalar_prefetch=0,
            grid=(num_m2, num_n),
            in_specs=[
                pl.BlockSpec((tm2, tn), lambda i, j: (i, j)),
                pl.BlockSpec((1, tn), lambda i, j: (0, j)),
                pl.BlockSpec((1, tn), lambda i, j: (0, j)),
            ],
            out_specs=pl.BlockSpec((tm2, tn), lambda i, j: (i, j)),
        ),
        compiler_params=pltpu.CompilerParams(
            dimension_semantics=("parallel", "parallel"),
            vmem_limit_bytes=vmem_limit,
        ),
        input_output_aliases={0: 0},   # same shape & dtype as y -> reuse buffer
    )(y, scale, shift)

    return out.reshape(B, N, Cout)


def linear_block_ref(x, w, b, gamma, beta, eps=BN_EPS):
    """Pure-JAX reference matching the PyTorch forward (train-mode BN, drop=0)."""
    y = jnp.einsum("bnc,oc->bno", x, w) + b          # fc
    yc = jnp.transpose(y, (0, 2, 1))                 # (B, Cout, N)
    mean = jnp.mean(yc, axis=(0, 2), keepdims=True)
    var = jnp.mean((yc - mean) ** 2, axis=(0, 2), keepdims=True)
    yn = (yc - mean) / jnp.sqrt(var + eps)
    yn = yn * gamma[None, :, None] + beta[None, :, None]
    yn = jnp.maximum(yn, 0.0)                        # ReLU
    return jnp.transpose(yn, (0, 2, 1))              # back to (B, N, Cout)


if __name__ == "__main__":
    root = jax.random.PRNGKey(0)
    k_cfg1, k_cfg2 = jax.random.split(root)

    def make_inputs(key, B, N, cin, cout):
        kx, kw, kb = jax.random.split(key, 3)
        x = jax.random.normal(kx, (B, N, cin), dtype=jnp.float32)
        # fc.weight ~ N(0, sqrt(2/out_features)); fc.bias keeps nn.Linear default.
        w = jax.random.normal(kw, (cout, cin), dtype=jnp.float32) * math.sqrt(2.0 / cout)
        bound = 1.0 / math.sqrt(cin)
        b = jax.random.uniform(kb, (cout,), minval=-bound, maxval=bound,
                               dtype=jnp.float32)
        gamma = jnp.ones((cout,), jnp.float32)   # bn.weight = 1
        beta = jnp.zeros((cout,), jnp.float32)   # bn.bias = 0
        return x, w, b, gamma, beta

    def check(out, ref, tag):
        if not bool(jnp.allclose(out, ref, atol=5e-4, rtol=5e-4)):
            err = float(jnp.max(jnp.abs(out - ref)))
            raise RuntimeError(f"Pallas kernel mismatch on {tag} (max |err| = {err})")

    # Small canonical shape implied by the module forward: (B, N, in_features).
    x, w, b, gamma, beta = make_inputs(k_cfg1, 2, 8, 32, 32)
    out = jax.block_until_ready(linear_block(x, w, b, gamma, beta))
    assert out.shape == (2, 8, 32) and out.dtype == x.dtype
    check(out, linear_block_ref(x, w, b, gamma, beta), "config 1")

    # Ragged / multi-tile config: exercises the partial-M row mask, the Cout
    # grid axis and the per-block partial-stats reduction.
    x, w, b, gamma, beta = make_inputs(k_cfg2, 2, 50, 24, 256)
    out = jax.block_until_ready(
        linear_block(x, w, b, gamma, beta, block_m=32, block_n=128))
    check(out, linear_block_ref(x, w, b, gamma, beta), "config 2")

    print("KERNEL_OK")
</pallas_src>

<mosaic_0001>
module attributes {stable_mosaic.version = 11 : i64} {
  func.func @matmul_stats_kernel(%arg0: i32, %arg1: i32, %arg2: memref<16x32xf32, #tpu.memory_space<vmem>>, %arg3: memref<32x32xf32, #tpu.memory_space<vmem>>, %arg4: memref<16x32xf32, #tpu.memory_space<vmem>>, %arg5: memref<1x2x32xf32, #tpu.memory_space<vmem>>) attributes {dimension_semantics = [#tpu.dimension_semantics<parallel>, #tpu.dimension_semantics<parallel>], iteration_bounds = array<i64: 1, 1>, scalar_prefetch = 0 : i64, scratch_operands = 0 : i64, tpu.core_type = #tpu.core_type<tc>, window_params = [{transform_indices = @transform_0, window_bounds = array<i64: 16, 32>}, {transform_indices = @transform_1, window_bounds = array<i64: 32, 32>}, {transform_indices = @transform_2, window_bounds = array<i64: 16, 32>}, {transform_indices = @transform_3, window_bounds = array<i64: 1, 2, 32>}]} {
    %c0 = arith.constant 0 : index
    %c0_0 = arith.constant 0 : index
    %0 = vector.load %arg2[%c0, %c0_0] : memref<16x32xf32, #tpu.memory_space<vmem>>, vector<16x32xf32>
    %c0_1 = arith.constant 0 : index
    %c0_2 = arith.constant 0 : index
    %1 = vector.load %arg3[%c0_1, %c0_2] : memref<32x32xf32, #tpu.memory_space<vmem>>, vector<32x32xf32>
    %cst = arith.constant dense<0.000000e+00> : vector<16x32xf32>
    %2 = tpu.matmul %0, %1, %cst {dimension_numbers = #tpu.dot_dimension_numbers<[1], [0], [0], [1], [0, 0, 1, 1], [], []>} : vector<16x32xf32>, vector<32x32xf32>, vector<16x32xf32> -> vector<16x32xf32>
    %c0_3 = arith.constant 0 : index
    %c0_4 = arith.constant 0 : index
    %3 = vector.load %arg4[%c0_3, %c0_4] : memref<16x32xf32, #tpu.memory_space<vmem>>, vector<16x32xf32>
    tpu.vector_store %arg4[%c0_3, %c0_4], %2 {strides = array<i32>} : memref<16x32xf32, #tpu.memory_space<vmem>>, vector<16x32xf32>,
    %cst_5 = arith.constant dense<0.000000e+00> : vector<32xf32>
    %4 = vector.multi_reduction <add>, %2, %cst_5 [0] : vector<16x32xf32> to vector<32xf32>
    %5 = vector.shape_cast %4 : vector<32xf32> to vector<1x32xf32>
    %6 = arith.mulf %2, %2 : vector<16x32xf32>
    %cst_6 = arith.constant dense<0.000000e+00> : vector<32xf32>
    %7 = vector.multi_reduction <add>, %6, %cst_6 [0] : vector<16x32xf32> to vector<32xf32>
    %8 = vector.shape_cast %7 : vector<32xf32> to vector<1x32xf32>
    %9 = tpu.concatenate %5, %8 in 0 : vector<1x32xf32>, vector<1x32xf32> -> vector<2x32xf32>
    %10 = vector.shape_cast %9 : vector<2x32xf32> to vector<1x2x32xf32>
    %c0_7 = arith.constant 0 : index
    %c0_8 = arith.constant 0 : index
    %c0_9 = arith.constant 0 : index
    %11 = vector.load %arg5[%c0_7, %c0_8, %c0_9] : memref<1x2x32xf32, #tpu.memory_space<vmem>>, vector<1x2x32xf32>
    tpu.vector_store %arg5[%c0_7, %c0_8, %c0_9], %10 {strides = array<i32>} : memref<1x2x32xf32, #tpu.memory_space<vmem>>, vector<1x2x32xf32>,
    return
  }
  func.func @transform_0(%arg0: i32, %arg1: i32) -> (i32, i32) {
    %c0_i32 = arith.constant 0 : i32
    %c0_i32_0 = arith.constant 0 : i32
    return %arg0, %c0_i32 : i32, i32
  }
  func.func @transform_1(%arg0: i32, %arg1: i32) -> (i32, i32) {
    %c0_i32 = arith.constant 0 : i32
    %c0_i32_0 = arith.constant 0 : i32
    return %c0_i32, %arg1 : i32, i32
  }
  func.func @transform_2(%arg0: i32, %arg1: i32) -> (i32, i32) {
    %c0_i32 = arith.constant 0 : i32
    return %arg0, %arg1 : i32, i32
  }
  func.func @transform_3(%arg0: i32, %arg1: i32) -> (i32, i32, i32) {
    %c0_i32 = arith.constant 0 : i32
    %c0_i32_0 = arith.constant 0 : i32
    return %arg0, %c0_i32, %arg1 : i32, i32, i32
  }
}

</mosaic_0001>

<bundles_post_ra>
// kernel: tpu_custom_call.1
= control target key start
LH: loop header
LB: loop body
LE: loop exit
PB: predicated region body
PF: predicated region fallthrough
CT: control target
= control target key end

     0   :  { %9 = vsyncpa [#allocation3], 0  ;;  %s357_s0 = inlined_call_operand.hbm [shape: f32[16,32], index: 0, kind: input, shape index: {}]   ;;  %s358_s1 = inlined_call_operand.hbm [shape: f32[32,32], index: 1, kind: input, shape index: {}]   ;;  %s359_s2 = inlined_call_operand.hbm [shape: f32[16,32], index: 2, kind: output, shape index: {0}]   ;;  %s360_s3 = inlined_call_operand.hbm [shape: f32[1,2,32], index: 3, kind: output, shape index: {1}]  }
   0x1   :  { %10 = vsyncpa [#allocation6], 0 }
   0x2   :  { %11 = vsyncpa [#allocation4], 0 }
   0x3   :  { %12 = vsyncpa [#allocation9], 0  ;;  %s302_s12 = smov [#allocation2]  }
   0x4   :  { %s18_s13 = sshll.u32 %s302_s12, 4  ;;  %s19_s13 = int_to_ptr.vmem [resolvable:$true] %s18_s13 }
   0x5   :  { %s222_s14 = scalar_lea.vmem %s19_s13, 256  ;;  %p227_p1 = scmp.lt.s32.totalorder %s19_s13, %s19_s13 }
   0x6   :  { %p223_p0 = scmp.ne.s32.totalorder %s19_s13, %s222_s14  ;;  %p228_p2 = scmp.lt.s32.totalorder %s222_s14, %s222_s14 }
   0x8   :  { %p229_p3 = por %p228_p2, %p227_p1 }
   0xa   :  { %p230_p4 = pnand %p229_p3, %p223_p0 }
   0xc   :  { %233 = shalt.err (!%p230_p4)
}
   0xd   :  { %s303_s15 = smov 128   ;;  %s304_s16 = smov 8  }
   0xe   :  { %24 = dma.hbm_to_vmem [thread:$0]  %s357_s0, 256, %s19_s13, [#allocation3], %s303_s15, %s303_s15, %s304_s16  }
   0xf   :  { %s305_s19 = smov [#allocation5]  }
  0x10   :  { %s30_s20 = sshll.u32 %s305_s19, 4  ;;  %s31_s20 = int_to_ptr.vmem [resolvable:$true] %s30_s20 }
  0x11   :  { %s242_s21 = scalar_lea.vmem %s31_s20, 512  ;;  %p247_p6 = scmp.lt.s32.totalorder %s31_s20, %s31_s20 }
  0x12   :  { %p243_p5 = scmp.ne.s32.totalorder %s31_s20, %s242_s21  ;;  %p248_p7 = scmp.lt.s32.totalorder %s242_s21, %s242_s21 }
  0x14   :  { %p249_p8 = por %p248_p7, %p247_p6 }
  0x16   :  { %p250_p9 = pnand %p249_p8, %p243_p5 }
  0x18   :  { %253 = shalt.err (!%p250_p9)
}
  0x19   :  { %36 = dma.hbm_to_vmem [thread:$0]  %s358_s1, 512, %s31_s20, [#allocation6], %s303_s15, %s303_s15, %s304_s16  }
  0x1a   :  { %294 = dma.done.wait [#allocation3], 256  }
  0x1b   :  { %295 = vsyncadd [#allocation3], 4294967040 }
  0x1c   :  { %296 = dma.done.wait [#allocation6], 512  }
  0x1d   :  { %297 = vsyncadd [#allocation6], 4294966784  ;;  %vm49_vm0 = vcmask 261120   ;;  %v48_v0 = vld [vmem:[#allocation5 + $0x18] sm:$0xff]  ;;  %v47_v1 = vld [vmem:[#allocation5 + $0x10] sm:$0xff]  ;;  %s306_s0 = smov [#allocation7]  }
  0x1e   :  { %197 = vmatprep.subr.mxu0 %v48_v0  ;;  %v43_v2 = vld [vmem:[#allocation2] sm:$0xff]  ;;  %v46_v3 = vld [vmem:[#allocation5 + $0x8] sm:$0xff]  ;;  %v45_v4 = vld [vmem:[#allocation5] sm:$0xff]  ;;  %s162_s1 = sshll.u32 %s306_s0, 4  ;;  %s163_s1 = int_to_ptr.vmem [resolvable:$true] %s162_s1 }
  0x1f   :  { %198 = vmatpush3.msra.mxu0 %v48_v0  ;;  %205 = vmatprep.mubr.msk.f32.mxu0 %vm49_vm0, %v43_v2  ;;  %v44_v5 = vld [vmem:[#allocation2 + $0x8] sm:$0xff]  ;;  %s254_s24 = scalar_lea.vmem %s163_s1, 256  ;;  %p259_p11 = scmp.lt.s32.totalorder %s163_s1, %s163_s1 }
  0x20   :  { %199 = vmatprep.subr.mxu0 %v47_v1  ;;  %p255_p10 = scmp.ne.s32.totalorder %s163_s1, %s254_s24  ;;  %p260_p12 = scmp.lt.s32.totalorder %s254_s24, %s254_s24 }
  0x21   :  { %200 = vmatpush3.msra.mxu0 %v47_v1 }
  0x22   :  { %201 = vmatprep.subr.mxu0 %v46_v3  ;;  %p261_p13 = por %p260_p12, %p259_p11 }
  0x23   :  { %202 = vmatpush3.msra.mxu0 %v46_v3 }
  0x24   :  { %203 = vmatprep.subr.mxu0 %v45_v4  ;;  %p262_p0 = pnand %p261_p13, %p255_p10 }
  0x25   :  { %204 = vmatpush3.msra.mxu0 %v45_v4 }
  0x26   :  { %206 = vmatmul.mubr.msk.f32.vlgmr.msra.gmra.mxu0 %vm49_vm0, %v44_v5 }
  0xe6   :  { %v207_v6 = vpop.f32.mrf.mxu0 }
  0xe7   :  { %v143_v7 = vmul.f32 %v207_v6, %v207_v6  ;;  %132 = vst.msk [vmem:[#allocation7 + $0x8] sm:$0xff] %vm49_vm0, %v207_v6  ;;  %v134_v9 = vsel %vm49_vm0, %v207_v6, 0.0 }
  0xe8   :  { %v122_v8 = vpop.f32.mrf.mxu0 }
  0xe9   :  { %131 = vst.msk [vmem:[#allocation7] sm:$0xff] %vm49_vm0, %v122_v8  ;;  %v133_v10 = vsel %vm49_vm0, %v122_v8, 0.0  ;;  %v142_v11 = vmul.f32 %v122_v8, %v122_v8 }
  0xea   :  { %v135_v12 = vadd.f32 %v134_v9, %v133_v10 }
  0xeb   :  { %265 = shalt.err (!%p262_p0)
}
  0xec   :  { %168 = dma.vmem_to_hbm [thread:$0]  %s163_s1, 256, %s359_s2, [#allocation4], %s303_s15, %s303_s15, %s304_s16   ;;  %v145_v13 = vsel %vm49_vm0, %v143_v7, 0.0  ;;  %v144_v14 = vsel %vm49_vm0, %v142_v11, 0.0  ;;  %v136_v15 = vrot.slane %v135_v12, 4  ;;  %vm153_vm1 = vcmask 1040384  }
  0xed   :  { %v146_v16 = vadd.f32 %v145_v13, %v144_v14  ;;  %s307_s27 = smov [#allocation8]   ;;  %vm155_vm2 = vcmask 254976  }
  0xee   :  { %v137_v17 = vadd.f32 %v136_v15, %v135_v12  ;;  %s175_s28 = sshll.u32 %s307_s27, 4  ;;  %s176_s28 = int_to_ptr.vmem [resolvable:$true] %s175_s28 }
  0xef   :  { %v147_v18 = vrot.slane %v146_v16, 4  ;;  %s274_s2 = scalar_lea.vmem %s176_s28, 32  ;;  %p279_p2 = scmp.lt.s32.totalorder %s176_s28, %s176_s28 }
  0xf0   :  { %v138_v19 = vrot.slane %v137_v17, 2  ;;  %p275_p1 = scmp.ne.s32.totalorder %s176_s28, %s274_s2  ;;  %p280_p3 = scmp.lt.s32.totalorder %s274_s2, %s274_s2 }
  0xf1   :  { %v148_v20 = vadd.f32 %v147_v18, %v146_v16 }
  0xf2   :  { %v139_v21 = vadd.f32 %v138_v19, %v137_v17  ;;  %p281_p4 = por %p280_p3, %p279_p2 }
  0xf3   :  { %v149_v22 = vrot.slane %v148_v20, 2 }
  0xf4   :  { %v140_v23 = vrot.slane %v139_v21, 1  ;;  %p282_p5 = pnand %p281_p4, %p275_p1 }
  0xf5   :  { %v150_v24 = vadd.f32 %v149_v22, %v148_v20 }
  0xf6   :  { %v141_v26 = vadd.f32 %v140_v23, %v139_v21 }
  0xf7   :  { %v151_v25 = vrot.slane %v150_v24, 1 }
  0xf9   :  { %v152_v27 = vadd.f32 %v151_v25, %v150_v24 }
  0xfb   :  { %v154_v28 = vsel %vm153_vm1, %v141_v26, %v152_v27 }
  0xfc   :  { %156 = vst.msk [vmem:[#allocation8] sm:$0x3] %vm155_vm2, %v154_v28 }
  0xfd   :  { %285 = shalt.err (!%p282_p5)
}
  0xfe   :  { %178 = dma.vmem_to_hbm [thread:$0]  %s176_s28, 32, %s360_s3, [#allocation9]  }
  0xff   :  { %298 = dma.done.wait [#allocation4], 256  }
 0x100   :  { %299 = vsyncadd [#allocation4], 4294967040 }
 0x101   :  { %300 = dma.done.wait [#allocation9], 32  }
 0x102   :  { %301 = vsyncadd [#allocation9], 4294967264 }
 0x103   :  { %185 = vsyncpa [#allocation3], 1 }
 0x104   :  { %186 = vsyncpa [#allocation6], 1 }
 0x105   :  { %187 = vsyncpa [#allocation4], 1 }
 0x106   :  { %188 = vsyncpa [#allocation9], 1 }

</bundles_post_ra>
